<compile_context>
chip_gen: v7x
topology: tpu7x:2x2x1
jax: 0.10.0
libtpu: 0.0.40
codegen_flags: <defaults>
</compile_context>

<pallas_src>
import functools

import jax
import jax.numpy as jnp
from jax.experimental import pallas as pl
from jax.experimental.pallas import tpu as pltpu


def _decoder_kernel(z_ref, w_ffw_ref, b_ffw_ref, w_head_ref, b_head_ref,
                    out_ref, *, num_layers, compute_dtype):
    # z arrives in f32 straight from HBM; cast to the MXU compute dtype here
    # (free VPU work under the MXU) instead of a separate wrapper-side HBM pass.
    h = z_ref[...].astype(compute_dtype)
    # Static python loop: num_layers is a compile-time constant and small.
    # TODO(synk): switch to lax.fori_loop(unroll=True) if num_layers grows large,
    # to bound vreg live ranges.
    for l in range(num_layers):
        acc = jnp.dot(h, w_ffw_ref[l], preferred_element_type=jnp.float32)
        b = b_ffw_ref[pl.ds(l, 1), :]                        # (1, E_pad) f32
        # Keep bias + ReLU in f32 on the VPU (v5e has no bf16 VPU path); one cast back.
        h = jnp.maximum(acc + b, 0.0).astype(compute_dtype)
    # Fused node+edge head: single wide lane-dense matmul + single store (bf16).
    head = jnp.dot(h, w_head_ref[...], preferred_element_type=jnp.float32)
    head = head + b_head_ref[...]
    out_ref[...] = jnp.maximum(head, 0.0).astype(out_ref.dtype)


def _round_up(x, m):
    return ((x + m - 1) // m) * m


def _const_spec(block_shape):
    """BlockSpec for a grid-invariant operand: always block (0, ..., 0), single-buffered."""
    index_map = lambda i: (0,) * len(block_shape)
    try:
        return pl.BlockSpec(block_shape, index_map, pipeline_mode=pl.Buffered(1))
    except TypeError:  # older JAX without pipeline_mode kwarg
        return pl.BlockSpec(block_shape, index_map)


def decoder_forward(z, batch_indices, params, *, row_tile=512,
                    compute_dtype=jnp.bfloat16):
    """Pallas Decoder forward.

    z:             (N, n_embd) float32 node embeddings.
    batch_indices: (N,) int32 graph ids (unused — unbatch/cat is identity).
    params: dict with
        'w_ffw'  : (num_layers, n_embd, n_embd)   (in, out) layout
        'b_ffw'  : (num_layers, n_embd)
        'w_node' : (n_embd, n_node_features)
        'b_node' : (1, n_node_features)
        'w_edge' : (n_embd, n_edge_features)
        'b_edge' : (1, n_edge_features)
    Returns (x, edge_attr): (N, n_node_features), (N, n_edge_features), dtype of z.
    """
    del batch_indices  # identity w.r.t. the math (see module-level comment)
    N, E = z.shape
    num_layers = int(params['w_ffw'].shape[0])
    Fn = int(params['w_node'].shape[1])
    Fe = int(params['w_edge'].shape[1])
    F = Fn + Fe

    out_dtype = z.dtype
    cbytes = jnp.dtype(compute_dtype).itemsize
    zbytes = jnp.dtype(z.dtype).itemsize

    # --- Lane-dense feature padding -------------------------------------------
    E_pad = max(128, _round_up(E, 128))        # hidden width (lane axis)
    F_pad = max(128, _round_up(F, 128))        # fused head output width

    # Zero-padded parameters (mathematically inert: zero inputs/weights, ReLU(0)=0).
    w_ffw = jnp.zeros((num_layers, E_pad, E_pad), jnp.float32)
    w_ffw = w_ffw.at[:, :E, :E].set(params['w_ffw'].astype(jnp.float32))
    b_ffw = jnp.zeros((num_layers, E_pad), jnp.float32)
    b_ffw = b_ffw.at[:, :E].set(params['b_ffw'].astype(jnp.float32))

    w_head = jnp.zeros((E_pad, F_pad), jnp.float32)
    w_head = w_head.at[:E, :Fn].set(params['w_node'].astype(jnp.float32))
    w_head = w_head.at[:E, Fn:F].set(params['w_edge'].astype(jnp.float32))
    b_head = jnp.zeros((1, F_pad), jnp.float32)
    b_head = b_head.at[:, :Fn].set(params['b_node'].reshape(1, Fn).astype(jnp.float32))
    b_head = b_head.at[:, Fn:F].set(params['b_edge'].reshape(1, Fe).astype(jnp.float32))

    # Weights to the MXU compute dtype (tiny, one-time); biases stay f32.
    w_ffw = w_ffw.astype(compute_dtype)
    w_head = w_head.astype(compute_dtype)

    # z stays f32 (cast in-kernel); only pad columns if E itself is lane-sparse.
    z_in = z if E_pad == E else jnp.pad(z, ((0, 0), (0, E_pad - E)))

    # --- Row tiling ------------------------------------------------------------
    # Big tiles toward the HBM roofline, but at least ~4 grid steps so both v7x
    # TensorCores get work via dimension_semantics=("parallel",).
    min_steps = 4
    rt = max(8, min(int(row_tile), _round_up(pl.cdiv(max(N, 1), min_steps), 8)))
    grid = (pl.cdiv(N, rt),)   # ragged last block: rows are independent, writes masked

    # --- Scheduler hint --------------------------------------------------------
    flops = 2 * N * E_pad * (num_layers * E_pad + F_pad)
    bytes_accessed = (N * E_pad * zbytes                              # z read (f32)
                      + num_layers * E_pad * E_pad * cbytes           # ffw weights
                      + num_layers * E_pad * 4                        # ffw biases
                      + E_pad * F_pad * cbytes + F_pad * 4            # head weights/bias
                      + N * F_pad * cbytes)                           # out write (bf16)
    cost = pl.CostEstimate(flops=int(flops), transcendentals=0,
                           bytes_accessed=int(bytes_accessed))

    # --- VMEM budget (no double counting) --------------------------------------
    weight_bytes = ((num_layers * E_pad * E_pad + E_pad * F_pad) * cbytes   # single-buffered
                    + (num_layers * E_pad + F_pad) * 4)
    io_bytes = 2 * rt * E_pad * zbytes + 2 * rt * F_pad * cbytes            # double-buffered tiles
    work_bytes = rt * E_pad * (4 + cbytes) + rt * F_pad * 4                 # h / f32 accumulators
    vmem_est = weight_bytes + io_bytes + work_bytes
    try:
        vmem_cap = int(pltpu.get_tpu_info().vmem_capacity_bytes)            # 64 MiB on v7x, 128 on v5e/v6e
    except Exception:
        vmem_cap = 64 * 1024 * 1024
    vmem_limit = int(min(max(2 * vmem_est, 16 * 1024 * 1024), int(0.8 * vmem_cap)))
    # TODO(synk): if num_layers*E_pad^2 weights ever approach the v7x budget, stream
    # the layer weights (extra "arbitrary" grid axis / emit_pipeline) instead of
    # keeping them fully resident.

    kernel = functools.partial(_decoder_kernel, num_layers=num_layers,
                               compute_dtype=compute_dtype)

    out = pl.pallas_call(
        kernel,
        out_shape=jax.ShapeDtypeStruct((N, F_pad), compute_dtype),
        grid_spec=pltpu.PrefetchScalarGridSpec(
            num_scalar_prefetch=0,
            grid=grid,
            in_specs=[
                # z tiled over rows; parameters are small & constant -> single buffer.
                pl.BlockSpec((rt, E_pad), lambda i: (i, 0)),
                _const_spec((num_layers, E_pad, E_pad)),
                _const_spec((num_layers, E_pad)),
                _const_spec((E_pad, F_pad)),
                _const_spec((1, F_pad)),
            ],
            out_specs=pl.BlockSpec((rt, F_pad), lambda i: (i, 0)),
        ),
        compiler_params=pltpu.CompilerParams(
            dimension_semantics=("parallel",),
            vmem_limit_bytes=vmem_limit),
        cost_estimate=cost,
    )(z_in, w_ffw, b_ffw, w_head, b_head)

    x = out[:, :Fn].astype(out_dtype)
    edge_attr = out[:, Fn:F].astype(out_dtype)
    return x, edge_attr


def init_params(key, n_embd, n_node_features, n_edge_features, num_layers=1):
    """Deterministic synthetic parameter init (Linear weights stored as (in, out))."""
    ks = jax.random.split(key, 6)
    scale_e = 1.0 / jnp.sqrt(n_embd)
    return {
        'w_ffw': jax.random.uniform(ks[0], (num_layers, n_embd, n_embd),
                                    jnp.float32, -scale_e, scale_e),
        'b_ffw': jax.random.uniform(ks[1], (num_layers, n_embd),
                                    jnp.float32, -scale_e, scale_e),
        'w_node': jax.random.uniform(ks[2], (n_embd, n_node_features),
                                     jnp.float32, -scale_e, scale_e),
        'b_node': jax.random.uniform(ks[3], (1, n_node_features),
                                     jnp.float32, -scale_e, scale_e),
        'w_edge': jax.random.uniform(ks[4], (n_embd, n_edge_features),
                                     jnp.float32, -scale_e, scale_e),
        'b_edge': jax.random.uniform(ks[5], (1, n_edge_features),
                                     jnp.float32, -scale_e, scale_e),
    }


def _reference_forward(z, params):
    """Pure-JAX f32 reference for correctness checking."""
    h = z
    for l in range(params['w_ffw'].shape[0]):
        h = jnp.maximum(h @ params['w_ffw'][l] + params['b_ffw'][l], 0.0)
    x = jnp.maximum(h @ params['w_node'] + params['b_node'], 0.0)
    e = jnp.maximum(h @ params['w_edge'] + params['b_edge'], 0.0)
    return x, e


if __name__ == "__main__":
    key = jax.random.PRNGKey(0)
    k_z, k_p = jax.random.split(key)

    # Small shapes consistent with the module: N nodes total across 2 graphs.
    N, n_embd = 16, 32
    n_node_features, n_edge_features = 8, 4
    num_layers = 1

    z = jax.random.normal(k_z, (N, n_embd), jnp.float32)
    batch_indices = jnp.concatenate(
        [jnp.zeros((N // 2,), jnp.int32), jnp.ones((N - N // 2,), jnp.int32)])

    params = init_params(k_p, n_embd, n_node_features, n_edge_features, num_layers)

    x, edge_attr = decoder_forward(z, batch_indices, params)
    jax.block_until_ready((x, edge_attr))

    x_ref, e_ref = _reference_forward(z, params)
    assert x.shape == (N, n_node_features) and edge_attr.shape == (N, n_edge_features)
    # bf16 MXU operands + bf16 output slab with f32 accumulation -> relaxed tolerance.
    assert jnp.allclose(x, x_ref, atol=5e-2, rtol=5e-2)
    assert jnp.allclose(edge_attr, e_ref, atol=5e-2, rtol=5e-2)

    print("KERNEL_OK")
</pallas_src>

<mosaic_0001>
module attributes {stable_mosaic.version = 11 : i64} {
  func.func @_decoder_kernel(%arg0: i32, %arg1: memref<8x128xf32, #tpu.memory_space<vmem>>, %arg2: memref<1x128x128xbf16, #tpu.memory_space<vmem>>, %arg3: memref<1x128xf32, #tpu.memory_space<vmem>>, %arg4: memref<128x128xbf16, #tpu.memory_space<vmem>>, %arg5: memref<1x128xf32, #tpu.memory_space<vmem>>, %arg6: memref<8x128xbf16, #tpu.memory_space<vmem>>) attributes {dimension_semantics = [#tpu.dimension_semantics<parallel>], iteration_bounds = array<i64: 2>, scalar_prefetch = 0 : i64, scratch_operands = 0 : i64, tpu.core_type = #tpu.core_type<tc>, window_params = [{transform_indices = @transform_0, window_bounds = array<i64: 8, 128>}, {pipeline_mode = #tpu.pipeline_mode<synchronous>, transform_indices = @transform_1, window_bounds = array<i64: 1, 128, 128>}, {pipeline_mode = #tpu.pipeline_mode<synchronous>, transform_indices = @transform_2, window_bounds = array<i64: 1, 128>}, {pipeline_mode = #tpu.pipeline_mode<synchronous>, transform_indices = @transform_3, window_bounds = array<i64: 128, 128>}, {pipeline_mode = #tpu.pipeline_mode<synchronous>, transform_indices = @transform_4, window_bounds = array<i64: 1, 128>}, {transform_indices = @transform_5, window_bounds = array<i64: 8, 128>}]} {
    %c0 = arith.constant 0 : index
    %c0_0 = arith.constant 0 : index
    %0 = vector.load %arg1[%c0, %c0_0] : memref<8x128xf32, #tpu.memory_space<vmem>>, vector<8x128xf32>
    %1 = arith.truncf %0 : vector<8x128xf32> to vector<8x128xbf16>
    %c0_1 = arith.constant 0 : index
    %c0_2 = arith.constant 0 : index
    %c0_3 = arith.constant 0 : index
    %2 = vector.load %arg2[%c0_1, %c0_2, %c0_3] : memref<1x128x128xbf16, #tpu.memory_space<vmem>>, vector<1x128x128xbf16>
    %3 = vector.shape_cast %2 : vector<1x128x128xbf16> to vector<128x128xbf16>
    %cst = arith.constant dense<0.000000e+00> : vector<8x128xf32>
    %4 = tpu.matmul %1, %3, %cst {dimension_numbers = #tpu.dot_dimension_numbers<[1], [0], [0], [1], [0, 0, 1, 1], [], []>} : vector<8x128xbf16>, vector<128x128xbf16>, vector<8x128xf32> -> vector<8x128xf32>
    %c0_4 = arith.constant 0 : index
    %c0_5 = arith.constant 0 : index
    %5 = vector.load %arg3[%c0_4, %c0_5] : memref<1x128xf32, #tpu.memory_space<vmem>>, vector<1x128xf32>
    %6 = vector.broadcast %5 : vector<1x128xf32> to vector<8x128xf32>
    %7 = arith.addf %4, %6 : vector<8x128xf32>
    %cst_6 = arith.constant 0.000000e+00 : f32
    %8 = vector.broadcast %cst_6 : f32 to vector<8x128xf32>
    %9 = arith.maximumf %7, %8 : vector<8x128xf32>
    %10 = arith.truncf %9 : vector<8x128xf32> to vector<8x128xbf16>
    %c0_7 = arith.constant 0 : index
    %c0_8 = arith.constant 0 : index
    %11 = vector.load %arg4[%c0_7, %c0_8] : memref<128x128xbf16, #tpu.memory_space<vmem>>, vector<128x128xbf16>
    %cst_9 = arith.constant dense<0.000000e+00> : vector<8x128xf32>
    %12 = tpu.matmul %10, %11, %cst_9 {dimension_numbers = #tpu.dot_dimension_numbers<[1], [0], [0], [1], [0, 0, 1, 1], [], []>} : vector<8x128xbf16>, vector<128x128xbf16>, vector<8x128xf32> -> vector<8x128xf32>
    %c0_10 = arith.constant 0 : index
    %c0_11 = arith.constant 0 : index
    %13 = vector.load %arg5[%c0_10, %c0_11] : memref<1x128xf32, #tpu.memory_space<vmem>>, vector<1x128xf32>
    %14 = vector.broadcast %13 : vector<1x128xf32> to vector<8x128xf32>
    %15 = arith.addf %12, %14 : vector<8x128xf32>
    %cst_12 = arith.constant 0.000000e+00 : f32
    %16 = vector.broadcast %cst_12 : f32 to vector<8x128xf32>
    %17 = arith.maximumf %15, %16 : vector<8x128xf32>
    %18 = arith.truncf %17 : vector<8x128xf32> to vector<8x128xbf16>
    %c0_13 = arith.constant 0 : index
    %c0_14 = arith.constant 0 : index
    %19 = vector.load %arg6[%c0_13, %c0_14] : memref<8x128xbf16, #tpu.memory_space<vmem>>, vector<8x128xbf16>
    tpu.vector_store %arg6[%c0_13, %c0_14], %18 {strides = array<i32>} : memref<8x128xbf16, #tpu.memory_space<vmem>>, vector<8x128xbf16>,
    return
  }
  func.func @transform_0(%arg0: i32) -> (i32, i32) {
    %c0_i32 = arith.constant 0 : i32
    %c0_i32_0 = arith.constant 0 : i32
    return %arg0, %c0_i32 : i32, i32
  }
  func.func @transform_1(%arg0: i32) -> (i32, i32, i32) {
    %c0_i32 = arith.constant 0 : i32
    %c0_i32_0 = arith.constant 0 : i32
    %c0_i32_1 = arith.constant 0 : i32
    %c0_i32_2 = arith.constant 0 : i32
    return %c0_i32, %c0_i32_0, %c0_i32_1 : i32, i32, i32
  }
  func.func @transform_2(%arg0: i32) -> (i32, i32) {
    %c0_i32 = arith.constant 0 : i32
    %c0_i32_0 = arith.constant 0 : i32
    %c0_i32_1 = arith.constant 0 : i32
    return %c0_i32, %c0_i32_0 : i32, i32
  }
  func.func @transform_3(%arg0: i32) -> (i32, i32) {
    %c0_i32 = arith.constant 0 : i32
    %c0_i32_0 = arith.constant 0 : i32
    %c0_i32_1 = arith.constant 0 : i32
    return %c0_i32, %c0_i32_0 : i32, i32
  }
  func.func @transform_4(%arg0: i32) -> (i32, i32) {
    %c0_i32 = arith.constant 0 : i32
    %c0_i32_0 = arith.constant 0 : i32
    %c0_i32_1 = arith.constant 0 : i32
    return %c0_i32, %c0_i32_0 : i32, i32
  }
  func.func @transform_5(%arg0: i32) -> (i32, i32) {
    %c0_i32 = arith.constant 0 : i32
    %c0_i32_0 = arith.constant 0 : i32
    return %arg0, %c0_i32 : i32, i32
  }
}

</mosaic_0001>

<bundles_post_ra>
// kernel: tpu_custom_call.1
= control target key start
LH: loop header
LB: loop body
LE: loop exit
PB: predicated region body
PF: predicated region fallthrough
CT: control target
= control target key end

     0   :  { %10 = vsyncpa [#allocation3], 0  ;;  %s1216_s0 = inlined_call_operand.hbm [shape: f32[16,128], index: 0, kind: input, shape index: {}]   ;;  %s1217_s1 = inlined_call_operand.hbm [shape: bf16[1,128,128], index: 1, kind: input, shape index: {}]   ;;  %s1218_s2 = inlined_call_operand.vmem [shape: f32[1,128], index: 2, kind: input, shape index: {}]   ;;  %s1219_s3 = inlined_call_operand.hbm [shape: bf16[128,128], index: 3, kind: input, shape index: {}]   ;;  %s1220_s4 = inlined_call_operand.vmem [shape: f32[1,128], index: 4, kind: input, shape index: {}]   ;;  %s1221_s5 = inlined_call_operand.hbm [shape: bf16[16,128], index: 5, kind: output, shape index: {}]  }
   0x1   :  { %12 = vsyncpa [#allocation3 + $0x1], 0 }
   0x2   :  { %13 = vsyncpa [#allocation6], 0 }
   0x3   :  { %14 = vsyncpa [#allocation4], 0 }
   0x4   :  { %16 = vsyncpa [#allocation4 + $0x1], 0  ;;  %s977_s18 = smov 0   ;;  %s979_s19 = smov 0  }
   0x5   :  { %s981_s20 = smov 0   ;;  %s983_s21 = smov 0  }
   0x6 LB: > { %s998_s22 = sadd.s32 4294967295, %s937_s21   ;;  %s602_s23 = sadd.s32 4294967294, %s937_s21   ;;  %s937_s21 = sphi %s983_s21, %s1241_s21   ;;  %s933_s20 = sphi %s981_s20, %s1240_s20   ;;  %s929_s19 = sphi %s979_s19, %s1239_s19   ;;  %s925_s18 = sphi %s977_s18, %s1238_s18  }
   0x7   : > { %p42_p0 = scmp.ne.s32.totalorder %s929_s19, %s925_s18  ;;  %p1222_p1 = scmp.eq.s32.totalorder %s998_s22, 0 }
   0x8   : > { %p156_p3 = scmp.eq.s32.totalorder %s602_s23, 1  ;;  %p603_p5 = scmp.ge.s32.totalorder %s937_s21, 1 }
   0x9   : > { %p1007_p4 = por %p1222_p1, %p42_p0  ;;  %p163_p7 = scmp.lt.s32.totalorder %s937_s21, 3 }
   0xa   : > { %p1012_p6 = por %p156_p3, %p42_p0  ;;  %s939_s27 = smov [#allocation5]  }
   0xb   : > { %s1225_s24 = scalar_select %p1007_p4, 1, 0 }
   0xc   : > { %s1226_s25 = scalar_select %p1012_p6, 1, 0 }
   0xd   : > { %p1017_p8 = pnand %p603_p5, %p163_p7  ;;  %s175_s28 = sshll.u32 %s939_s27, 4  ;;  %s1021_s28 = int_to_ptr.vmem [resolvable:$true] %s175_s28 }
   0xe   : > { %s940_s30 = smov [#allocation7]   ;;  %s781_s9 = scalar_lea.hbm %s1217_s1, 1024 }
   0xf   : > { %p706_p9 = pneg %p1017_p8  ;;  %s191_s6 = sshll.u32 %s940_s30, 4  ;;  %s1032_s6 = int_to_ptr.vmem [resolvable:$true] %s191_s6 }
  0x10   : > { %p782_p12 = scmp.ne.s32.totalorder %s1217_s1, %s781_s9  ;;  %p788_p5 = scmp.lt.u32.totalorder %s781_s9, %s1217_s1 }
  0x11   : > { %p1028_p11 = pnand %p706_p9, %p1222_p1 }
  0x13   : > { %p783_p13 = pneg %p1028_p11 }
  0x15   : > { %p784_p0 = pnand %p783_p13, %p782_p12 }
  0x17   : > { %p785_p3 = pneg %p784_p0 }
  0x19   : > { %p790_p7 = pnand %p788_p5, %p785_p3 }
  0x1b   : > { %793 = shalt.err (!%p790_p7)
}
  0x1c   : > { %s794_s14 = scalar_lea.vmem %s1021_s28, 1024  ;;  %p802_p2 = scmp.lt.s32.totalorder %s1021_s28, %s1021_s28 }
  0x1d   : > { %p795_p9 = scmp.ne.s32.totalorder %s1021_s28, %s794_s14  ;;  %p803_p12 = scmp.lt.s32.totalorder %s794_s14, %s794_s14 }
  0x1f   : > { %p797_p10 = pnand %p795_p9, %p783_p13  ;;  %p804_p0 = por %p803_p12, %p802_p2 }
  0x21   : > { %p798_p1 = pneg %p797_p10 }
  0x23   : > { %p805_p6 = pnand %p804_p0, %p798_p1 }
  0x25   : > { %808 = shalt.err (!%p805_p6)
}
  0x26   : > { %s941_s15 = smov 64   ;;  %s942_s16 = smov 4  }
  0x27   : > { %709 = dma.hbm_to_vmem [thread:$0]  (!%p1028_p11), %s1217_s1, 1024, %s1021_s28, [#allocation6], %s941_s15, %s941_s15, %s942_s16  }
  0x28   : > { %s809_s7 = scalar_lea.hbm %s1219_s3, 1024 }
  0x29   : > { %p810_p2 = scmp.ne.s32.totalorder %s1219_s3, %s809_s7  ;;  %p816_p10 = scmp.lt.u32.totalorder %s809_s7, %s1219_s3 }
  0x2b   : > { %p812_p1 = pnand %p810_p2, %p783_p13 }
  0x2d   : > { %p813_p6 = pneg %p812_p1 }
  0x2f   : > { %p818_p3 = pnand %p816_p10, %p813_p6 }
  0x31   : > { %821 = shalt.err (!%p818_p3)
}
  0x32   : > { %s822_s28 = scalar_lea.vmem %s1032_s6, 1024  ;;  %p830_p12 = scmp.lt.s32.totalorder %s1032_s6, %s1032_s6 }
  0x33   : > { %p823_p5 = scmp.ne.s32.totalorder %s1032_s6, %s822_s28  ;;  %p831_p0 = scmp.lt.s32.totalorder %s822_s28, %s822_s28 }
  0x35   : > { %p825_p7 = pnand %p823_p5, %p783_p13  ;;  %p832_p2 = por %p831_p0, %p830_p12 }
  0x37   : > { %p826_p9 = pneg %p825_p7 }
  0x39   : > { %p833_p1 = pnand %p832_p2, %p826_p9 }
  0x3b   : > { %836 = shalt.err (!%p833_p1)
}
  0x3c   : > { %712 = dma.hbm_to_vmem [thread:$0]  (!%p1028_p11), %s1219_s3, 1024, %s1032_s6, [#allocation6], %s941_s15, %s941_s15, %s942_s16  }
  0x3d   : > { %s1087_s14 = sadd.s32 1, %s937_s21   ;;  %s29_s29 = sadd.s32 1, %s933_s20 }
  0x3e   : > { %s26_s17 = ssub.s32 %s937_s21, %s1087_s14  ;;  %p36_p13 = scmp.ne.s32.totalorder %s933_s20, %s929_s19 }
  0x3f   : > { %p27_p6 = scmp.eq.s32.totalorder %s26_s17, 0  ;;  %p37_p10 = scmp.eq.s32.totalorder %s937_s21, 0 }
  0x40   : > { %p1229_p3 = scmp.eq.s32.totalorder %s998_s22, 1  ;;  %p723_p7 = scmp.lt.s32.totalorder %s937_s21, 2 }
  0x41   : > { %s1103_s27 = scalar_select %p27_p6, %s933_s20, %s29_s29  }
  0x42   : > { %p1097_p5 = por %p1229_p3, %p36_p13  ;;  %p38_p9 = por %p37_p10, %p36_p13 }
  0x43   : > { %s208_s30 = sand.u32 1, %s933_s20   ;;  %s608_s6 = sshll.u32 %s937_s21, 7 }
  0x44   : > { %s1230_s23 = scalar_select %p1097_p5, 1, 0 }
  0x45   : > { %s607_s7 = sshll.u32 %s208_s30, 3  ;;  %s1110_s8 = scalar_lea.hbm %s1216_s0, %s608_s6 }
  0x46   : > { %s212_s9 = scalar_lea.vmem [#allocation2], %s607_s7  ;;  %p1114_p11 = pnand %p723_p7, %p38_p9 }
  0x47   : > { %s219_s10 = sshll.u32 %s212_s9, 4  ;;  %s209_s28 = scalar_lea.sflag [#allocation3], %s208_s30  ;;  %s1112_s10 = int_to_ptr.vmem [resolvable:$true] %s219_s10 }
  0x48   : > { %s837_s12 = scalar_lea.hbm %s1110_s8, 128  ;;  %p839_p0 = pneg %p1114_p11 }
  0x49   : > { %p838_p12 = scmp.ne.s32.totalorder %s1110_s8, %s837_s12  ;;  %s842_s17 = scalar_lea.hbm %s1216_s0, 256 }
  0x4a   : > { %p843_p13 = scmp.lt.u32.totalorder %s1110_s8, %s1216_s0  ;;  %p844_p6 = scmp.lt.u32.totalorder %s842_s17, %s837_s12 }
  0x4b   : > { %p840_p2 = pnand %p839_p0, %p838_p12  ;;  %p846_p3 = scmp.lt.u32.totalorder %s837_s12, %s1110_s8 }
  0x4c   : > { %p845_p10 = por %p844_p6, %p843_p13 }
  0x4d   : > { %p841_p1 = pneg %p840_p2 }
  0x4e   : > { %p847_p7 = por %p846_p3, %p845_p10 }
  0x50   : > { %p848_p9 = pnand %p847_p7, %p841_p1 }
  0x52   : > { %851 = shalt.err (!%p848_p9)
}
  0x53   : > { %s852_s30 = scalar_lea.vmem %s1112_s10, 128  ;;  %s943_s15 = smov [#allocation2]  }
  0x54   : > { %p853_p12 = scmp.ne.s32.totalorder %s1112_s10, %s852_s30  ;;  %s857_s16 = sshll.u32 %s943_s15, 4  ;;  %s858_s16 = int_to_ptr.vmem [resolvable:$false] %s857_s16 }
  0x55   : > { %s859_s9 = scalar_lea.vmem %s858_s16, 256  ;;  %p860_p4 = scmp.lt.s32.totalorder %s1112_s10, %s858_s16 }
  0x56   : > { %p855_p2 = pnand %p853_p12, %p839_p0  ;;  %p861_p13 = scmp.lt.s32.totalorder %s859_s9, %s852_s30 }
  0x58   : > { %p856_p5 = pneg %p855_p2  ;;  %p862_p6 = por %p861_p13, %p860_p4 }
  0x5a   : > { %p863_p10 = pnand %p862_p6, %p856_p5 }
  0x5c   : > { %866 = shalt.err (!%p863_p10)
}
  0x5d   : > { %716 = dma.hbm_to_vmem [thread:$0]  (!%p1114_p11), %s1110_s8, 128, %s1112_s10, %s209_s28  }
  0x5e   : > { %228 = sbr.rel (%p1017_p8) target bundleno = 589 (0x24d), region = 40  ;;  %s1146_s12 = sand.u32 (!%p1017_p8), 1, %s929_s19  }
  0x5f   : > { %s610_s13 = sshll.u32 (!%p1017_p8), %s1146_s12, 3  ;;  %s231_s29 = scalar_lea.sflag (!%p1017_p8), [#allocation3], %s1146_s12 }
  0x60   : > { %s1150_s17 = scalar_lea.vmem (!%p1017_p8), [#allocation2], %s610_s13  ;;  %p1232_p4 = scmp.ne.s32.totalorder (!%p1017_p8), %s1225_s24, 0 }
  0x65   : > { %912 = dma.done.wait (%p1232_p4), %s231_s29, 128  }
  0x66   : > { %914 = vsyncadd (%p1232_p4), %s231_s29, 4294967168  ;;  %p1233_p5 = scmp.eq.s32.totalorder %s998_s22, 0 }
  0x68   : > { %916 = dma.done.wait (%p1233_p5), [#allocation6], 2048   ;;  %p1234_p8 = pmov %p1233_p5 }
  0x69   : > { %v944_v0 = vmov 0.0   ;;  %vm945_vm0 = vmmov 0   ;;  %v765_v1 = vld [vmem:[#allocation5] sm:$0xff]   ;;  %v766_v2 = vld [vmem:[#allocation5 + $0x8] sm:$0xff]   ;;  %v767_v3 = vld [vmem:[#allocation5 + $0x10] sm:$0xff]   ;;  %s613_s8 = sshll.u32 %s1146_s12, 2 }
  0x6a   : > { %918 = vsyncadd (%p1234_p8), [#allocation6], 4294965248  ;;  %654 = vmatprep.subr.bf16.mxu0 %v944_v0  ;;  %670 = vmatprep.mubr.msk.bf16.mxu0 %vm945_vm0, %v944_v0  ;;  %v773_v4 = vld [vmem:[#allocation7] sm:$0xff]   ;;  %v768_v5 = vld [vmem:[#allocation5 + $0x18] sm:$0xff]   ;;  %s633_s28 = sshll.u32 %s998_s22, 6  ;;  %s268_s7 = scalar_lea.vmem [#allocation8], %s613_s8 }
  0x6b   : > { %674 = vmatprep.subr.bf16.mxu1 %v944_v0  ;;  %690 = vmatprep.mubr.msk.bf16.mxu1 %vm945_vm0, %v944_v0  ;;  %v774_v6 = vld [vmem:[#allocation7 + $0x8] sm:$0xff]   ;;  %v769_v7 = vld [vmem:[#allocation5 + $0x20] sm:$0xff]   ;;  %v775_v8 = vld [vmem:[#allocation7 + $0x10] sm:$0xff]   ;;  %s513_s6 = sshll.u32 %s268_s7, 4  ;;  %s1172_s16 = scalar_lea.hbm %s1221_s5, %s633_s28  ;;  %s1174_s6 = int_to_ptr.vmem [resolvable:$true] %s513_s6 }
  0x6c   : > { %655 = vmatpush3.bf16.msra.mxu0 %v765_v1  ;;  %675 = vmatpush3.bf16.msra.mxu1 %v773_v4  ;;  %v770_v9 = vld [vmem:[#allocation5 + $0x28] sm:$0xff]   ;;  %v776_v10 = vld [vmem:[#allocation7 + $0x18] sm:$0xff]   ;;  %v771_v11 = vld [vmem:[#allocation5 + $0x30] sm:$0xff]   ;;  %s500_s9 = scalar_lea.sflag [#allocation4], %s1146_s12  ;;  %s867_s13 = scalar_lea.vmem %s1174_s6, 64 }
  0x6d   : > { %656 = vmatprep.subr.bf16.mxu0 %v944_v0  ;;  %676 = vmatprep.subr.bf16.mxu1 %v944_v0  ;;  %v777_v12 = vld [vmem:[#allocation7 + $0x20] sm:$0xff]   ;;  %v772_v13 = vld [vmem:[#allocation5 + $0x38] sm:$0xff]   ;;  %v778_v15 = vld [vmem:[#allocation7 + $0x28] sm:$0xff]   ;;  %p868_p11 = scmp.ne.s32.totalorder %s1174_s6, %s867_s13  ;;  %p1235_p0 = scmp.ne.s32.totalorder %s1230_s23, 0 }
  0x6e   : > { %v270_v14 = vld [vmem:[%s1150_s17] sm:$0xff]  ;;  %s946_s22 = smov [#allocation8]  }
  0x6f   : > { %v271_v16 = vpack.c.bf16 %v270_v14, %v270_v14  ;;  %v779_v17 = vld [vmem:[#allocation7 + $0x30] sm:$0xff]   ;;  %v780_v18 = vld [vmem:[#allocation7 + $0x38] sm:$0xff]   ;;  %p869_p1 = pnand %p868_p11, %p1235_p0  ;;  %s871_s29 = sshll.u32 %s946_s22, 4  ;;  %s872_s29 = int_to_ptr.vmem [resolvable:$false] %s871_s29 }
  0x70   : > { %657 = vmatpush3.bf16.msra.mxu0 %v766_v2  ;;  %677 = vmatpush3.bf16.msra.mxu1 %v774_v6  ;;  %v614_v19 = vld [vmem:[%s1218_s2] ss:$0 sm:$0xff]  ;;  %s873_s17 = scalar_lea.vmem %s872_s29, 128  ;;  %p874_p7 = scmp.lt.s32.totalorder %s1174_s6, %s872_s29 }
  0x71   : > { %658 = vmatprep.subr.bf16.mxu0 %v944_v0  ;;  %678 = vmatprep.subr.bf16.mxu1 %v944_v0  ;;  %v623_v27 = vld [vmem:[%s1220_s4] ss:$0 sm:$0xff]  ;;  %p870_p3 = pneg %p869_p1  ;;  %p875_p9 = scmp.lt.s32.totalorder %s873_s17, %s867_s13 }
  0x73   : > { %p876_p12 = por %p875_p9, %p874_p7 }
  0x74   : > { %659 = vmatpush3.bf16.msra.mxu0 %v767_v3  ;;  %679 = vmatpush3.bf16.msra.mxu1 %v775_v8 }
  0x75   : > { %660 = vmatprep.subr.bf16.mxu0 %v944_v0  ;;  %680 = vmatprep.subr.bf16.mxu1 %v944_v0  ;;  %p877_p2 = pnand %p876_p12, %p870_p3 }
  0x78   : > { %661 = vmatpush3.bf16.msra.mxu0 %v768_v5  ;;  %681 = vmatpush3.bf16.msra.mxu1 %v776_v10 }
  0x79   : > { %662 = vmatprep.subr.bf16.mxu0 %v944_v0  ;;  %682 = vmatprep.subr.bf16.mxu1 %v944_v0 }
  0x7c   : > { %663 = vmatpush3.bf16.msra.mxu0 %v769_v7  ;;  %683 = vmatpush3.bf16.msra.mxu1 %v777_v12 }
  0x7d   : > { %664 = vmatprep.subr.bf16.mxu0 %v944_v0  ;;  %684 = vmatprep.subr.bf16.mxu1 %v944_v0 }
  0x80   : > { %665 = vmatpush3.bf16.msra.mxu0 %v770_v9  ;;  %685 = vmatpush3.bf16.msra.mxu1 %v778_v15 }
  0x81   : > { %666 = vmatprep.subr.bf16.mxu0 %v944_v0  ;;  %686 = vmatprep.subr.bf16.mxu1 %v944_v0 }
  0x84   : > { %667 = vmatpush3.bf16.msra.mxu0 %v771_v11  ;;  %687 = vmatpush3.bf16.msra.mxu1 %v779_v17 }
  0x85   : > { %668 = vmatprep.subr.bf16.mxu0 %v944_v0  ;;  %688 = vmatprep.subr.bf16.mxu1 %v944_v0 }
  0x88   : > { %669 = vmatpush3.bf16.msra.mxu0 %v772_v13  ;;  %689 = vmatpush3.bf16.msra.mxu1 %v780_v18 }
  0x8b   : > { %671 = vmatmul.mubr.bf16.vlgmr.msra.gmra.mrb[0].mxu0 %v271_v16 }
 0x15e   : > { %v377_v20 = vpop.f32.mrb[0].mxu0 }
 0x15f   : > { %v378_v21 = vadd.f32 %v614_v19, %v377_v20  ;;  %v672_v22 = vpop.f32.mrb[1].mxu0 }
 0x160   : > { %v380_v23 = vpop.f32.mrb[2].mxu0 }
 0x161   : > { %v383_v24 = vmax.f32 %v378_v21, 0.0  ;;  %v673_v25 = vpop.f32.mrb[3].mxu0 }
 0x163   : > { %v384_v26 = vpack.c.bf16 %v383_v24, %v383_v24 }
 0x165   : > { %691 = vmatmul.mubr.bf16.vlgmr.msra.gmra.mrb[0].mxu1 %v384_v26 }
 0x238   : > { %v490_v28 = vpop.f32.mrb[0].mxu1 }
 0x239   : > { %v491_v29 = vadd.f32 %v623_v27, %v490_v28  ;;  %v692_v30 = vpop.f32.mrb[1].mxu1 }
 0x23a   : > { %v493_v31 = vpop.f32.mrb[2].mxu1 }
 0x23b   : > { %v496_v32 = vmax.f32 %v491_v29, 0.0  ;;  %v693_v33 = vpop.f32.mrb[3].mxu1 }
 0x23d   : > { %v497_v34 = vpack.c.bf16 %v496_v32, %v496_v32 }
 0x23f   : > { %498 = vst [vmem:[%s268_s7] sm:$0xf] %v497_v34 }
 0x240   : > { %880 = shalt.err (!%p877_p2)
}
 0x241   : > { %s881_s12 = scalar_lea.hbm %s1172_s16, 64  ;;  %s885_s8 = scalar_lea.hbm %s1221_s5, 128 }
 0x242   : > { %p882_p13 = scmp.ne.s32.totalorder %s1172_s16, %s881_s12  ;;  %p886_p4 = scmp.lt.u32.totalorder %s1172_s16, %s1221_s5 }
 0x243   : > { %p887_p5 = scmp.lt.u32.totalorder %s885_s8, %s881_s12  ;;  %p889_p11 = scmp.lt.u32.totalorder %s881_s12, %s1172_s16 }
 0x244   : > { %p883_p6 = pnand %p882_p13, %p1235_p0 }
 0x245   : > { %p888_p8 = por %p887_p5, %p886_p4 }
 0x246   : > { %p884_p10 = pneg %p883_p6 }
 0x247   : > { %p890_p1 = por %p889_p11, %p888_p8 }
 0x249   : > { %p891_p3 = pnand %p890_p1, %p884_p10 }
 0x24b   : > { %894 = shalt.err (!%p891_p3)
}
 0x24c   : > { %704 = dma.vmem_to_hbm [thread:$0]  (%p1235_p0), %s1174_s6, 64, %s1172_s16, %s500_s9  }
 0x24d PF: > { %s525_s28 = sand.u32 1, %s925_s18   ;;  %p1236_p7 = scmp.ne.s32.totalorder %s1226_s25, 0 }
 0x24e   : > { %p1237_p9 = scmp.ge.s32.totalorder %s937_s21, 2  ;;  %s526_s7 = scalar_lea.sflag [#allocation4], %s525_s28 }
 0x250   : > { %p718_p12 = pnand %p1237_p9, %p1236_p7 }
 0x252   : > { %920 = dma.done.wait (!%p718_p12), %s526_s7, 64  }
 0x253   : > { %922 = vsyncadd (!%p718_p12), %s526_s7, 4294967232  ;;  %p19_p2 = scmp.ge.s32.totalorder %s1087_s14, 4   ;;  %s1238_s18 = smov %s929_s19 }
 0x254   : > { %s1239_s19 = smov %s933_s20  ;;  %s1240_s20 = smov %s1103_s27 }
 0x255   : > { %s1241_s21 = smov %s1087_s14  ;;  %21 = sbr.rel (!%p19_p2) target bundleno = 6 (0x6), region = 93 }
 0x25c   :  { %531 = vsyncpa [#allocation3], 1 }
 0x25d   :  { %533 = vsyncpa [#allocation3 + $0x1], 1 }
 0x25e   :  { %534 = vsyncpa [#allocation6], 1 }
 0x25f   :  { %535 = vsyncpa [#allocation4], 1 }
 0x260   :  { %537 = vsyncpa [#allocation4 + $0x1], 1 }

</bundles_post_ra>
